<compile_context>
chip_gen: v6e
topology: v6e:2x2x1
jax: 0.10.0
libtpu: 0.0.40
codegen_flags: <defaults>
</compile_context>

<pallas_src>
import functools

import jax
import jax.numpy as jnp
from jax.experimental import pallas as pl
from jax.experimental.pallas import tpu as pltpu


def _ls_kernel(pred_ref, target_ref, loss_ref, *, smoothing, epsilon, lane_dense):
    # Upcast inside the kernel so HBM traffic stays in the input dtype (bf16-friendly).
    x = pred_ref[...].astype(jnp.float32)                            # (TB, C) f32
    n_classes = x.shape[-1]

    # F.softplus with beta=1, threshold=20: linear above the threshold.
    sp = jnp.where(x > 20.0, x, jnp.log1p(jnp.exp(jnp.minimum(x, 20.0))))

    denom = jnp.sum(sp, axis=-1, keepdims=True) + epsilon            # (TB, 1)

    # log(prob + eps) = log(sp/denom + eps) = log(sp + eps*denom) - log(denom)
    # -> removes the (TB, C) divide and the `prob` intermediate; logs go to the EUP.
    log_term = jnp.log(sp + epsilon * denom)                         # (TB, C)
    log_denom = jnp.log(denom)                                       # (TB, 1)

    # Fused reduction: loss = -sum(w * log_prob) with w = s/C + (1-s)*onehot, sum(w) == 1
    #                       = log(denom) - sum(w * log_term)
    tgt = target_ref[...]                                            # (TB, 1) i32
    class_ids = jax.lax.broadcasted_iota(jnp.int32, x.shape, 1)
    uniform_w = smoothing / n_classes
    weight = jnp.where(class_ids == tgt, uniform_w + (1.0 - smoothing), uniform_w)

    loss_col = log_denom - jnp.sum(weight * log_term, axis=-1, keepdims=True)  # (TB, 1)

    if lane_dense:
        loss_ref[...] = loss_col.T          # (1, TB) lane-dense store (unmasked vst)
    else:
        loss_ref[...] = loss_col            # (TB, 1) column fallback (masked stores)


def make_label_smoothing_loss(smoothing: float = 0.001, epsilon: float = 1e-8,
                              block_rows: int | None = None):
    """Returns callable(pred, target) -> loss matching the PyTorch module's forward."""

    def loss_fn(pred, target):
        B, C = pred.shape
        if not jnp.issubdtype(pred.dtype, jnp.floating):
            pred = pred.astype(jnp.float32)
        itemsize = jnp.dtype(pred.dtype).itemsize
        target_col = target.astype(jnp.int32).reshape(B, 1)

        # --- VMEM budget / tile size (generation aware: v7x 64 MiB, v5e/v6e 128 MiB) ---
        try:
            vmem_cap = int(pltpu.get_tpu_info().vmem_capacity_bytes)
        except Exception:
            vmem_cap = 64 * 1024 * 1024
        vmem_limit = min((vmem_cap * 3) // 4, 100 * 1024 * 1024)

        if block_rows is None:
            # double-buffered pred tile + ~3 live f32 (TB, C) intermediates per row
            bytes_per_row = 2 * C * itemsize + 12 * C + 32
            tb = int(vmem_limit * 0.6) // bytes_per_row
            tb = max(8, min(tb, 2048))
        else:
            tb = max(1, int(block_rows))

        if tb >= B:
            tb = B                                   # single block: dims equal full dims
        elif tb >= 128:
            tb = (tb // 128) * 128                   # lane-dense output tiles
        else:
            tb = max(8, (tb // 8) * 8)               # keep the (8, _) sublane rule
        # TODO(synk): vocab-scale C where even one (8, C) row block exceeds VMEM needs a
        # second, "arbitrary" C-axis grid pass with f32 scratch accumulators (two-pass).

        num_blocks = pl.cdiv(B, tb)
        lane_dense = (tb == B) or (tb % 128 == 0)

        kernel = functools.partial(
            _ls_kernel, smoothing=float(smoothing), epsilon=float(epsilon),
            lane_dense=lane_dense)

        if lane_dense:
            out_shape = jax.ShapeDtypeStruct((1, B), jnp.float32)
            out_spec = pl.BlockSpec((1, tb), lambda i: (0, i))
        else:
            out_shape = jax.ShapeDtypeStruct((B, 1), jnp.float32)
            out_spec = pl.BlockSpec((tb, 1), lambda i: (i, 0))

        out = pl.pallas_call(
            kernel,
            out_shape=out_shape,
            grid=(num_blocks,),
            in_specs=[
                pl.BlockSpec((tb, C), lambda i: (i, 0)),
                pl.BlockSpec((tb, 1), lambda i: (i, 0)),
            ],
            out_specs=out_spec,
            compiler_params=pltpu.CompilerParams(
                dimension_semantics=("parallel",),
                vmem_limit_bytes=int(vmem_limit),
            ),
        )(pred, target_col)

        return out.reshape(B)                        # match PyTorch (B,) output

    return loss_fn


def _reference(pred, target, smoothing=0.001, epsilon=1e-8):
    """Pure-JAX reference mirroring the PyTorch module."""
    pred = pred.astype(jnp.float32)
    n_classes = pred.shape[-1]
    sp = jax.nn.softplus(pred)
    prob = sp / (jnp.sum(sp, axis=-1, keepdims=True) + epsilon)
    log_prob = jnp.log(prob + epsilon)
    nll = -jnp.take_along_axis(log_prob, target[:, None], axis=-1)[:, 0]
    smooth = -jnp.sum(log_prob, axis=-1) / n_classes
    return (1.0 - smoothing) * nll + smoothing * smooth


if __name__ == "__main__":
    key = jax.random.PRNGKey(0)
    k_pred, k_tgt = jax.random.split(key)

    B, C = 8, 32                               # small shapes: batch=8, n_classes=32
    pred = jax.random.normal(k_pred, (B, C), dtype=jnp.float32)
    target = jax.random.randint(k_tgt, (B,), 0, C, dtype=jnp.int32)

    loss_fn = make_label_smoothing_loss(smoothing=0.001, epsilon=1e-8)
    loss = jax.block_until_ready(loss_fn(pred, target))

    ref = _reference(pred, target)
    assert loss.shape == (B,)
    assert jnp.allclose(loss, ref, atol=1e-5, rtol=1e-5), (loss, ref)

    print("KERNEL_OK")
</pallas_src>

<mosaic_0001>
module attributes {stable_mosaic.version = 11 : i64} {
  func.func @_ls_kernel(%arg0: i32, %arg1: memref<8x32xf32, #tpu.memory_space<vmem>>, %arg2: memref<8x1xi32, #tpu.memory_space<vmem>>, %arg3: memref<1x8xf32, #tpu.memory_space<vmem>>) attributes {dimension_semantics = [#tpu.dimension_semantics<parallel>], iteration_bounds = array<i64: 1>, scalar_prefetch = 0 : i64, scratch_operands = 0 : i64, tpu.core_type = #tpu.core_type<tc>, window_params = [{transform_indices = @transform_0, window_bounds = array<i64: 8, 32>}, {transform_indices = @transform_1, window_bounds = array<i64: 8, 1>}, {transform_indices = @transform_2, window_bounds = array<i64: 1, 8>}]} {
    %c0 = arith.constant 0 : index
    %c0_0 = arith.constant 0 : index
    %0 = vector.load %arg1[%c0, %c0_0] : memref<8x32xf32, #tpu.memory_space<vmem>>, vector<8x32xf32>
    %cst = arith.constant 2.000000e+01 : f32
    %1 = vector.broadcast %cst : f32 to vector<8x32xf32>
    %2 = arith.cmpf ogt, %0, %1 : vector<8x32xf32>
    %cst_1 = arith.constant 2.000000e+01 : f32
    %3 = vector.broadcast %cst_1 : f32 to vector<8x32xf32>
    %4 = arith.minimumf %0, %3 : vector<8x32xf32>
    %5 = math.exp %4 : vector<8x32xf32>
    %6 = math.log1p %5 : vector<8x32xf32>
    %7 = arith.select %2, %0, %6 : vector<8x32xi1>, vector<8x32xf32>
    %cst_2 = arith.constant dense<0.000000e+00> : vector<8xf32>
    %8 = vector.multi_reduction <add>, %7, %cst_2 [1] : vector<8x32xf32> to vector<8xf32>
    %9 = vector.shape_cast %8 : vector<8xf32> to vector<8x1xf32>
    %cst_3 = arith.constant 9.99999993E-9 : f32
    %10 = vector.broadcast %cst_3 : f32 to vector<8x1xf32>
    %11 = arith.addf %9, %10 : vector<8x1xf32>
    %cst_4 = arith.constant 9.99999993E-9 : f32
    %12 = vector.broadcast %cst_4 : f32 to vector<8x1xf32>
    %13 = arith.mulf %12, %11 : vector<8x1xf32>
    %14 = vector.broadcast %13 : vector<8x1xf32> to vector<8x32xf32>
    %15 = arith.addf %7, %14 : vector<8x32xf32>
    %16 = math.log %15 : vector<8x32xf32>
    %17 = math.log %11 : vector<8x1xf32>
    %c0_5 = arith.constant 0 : index
    %c0_6 = arith.constant 0 : index
    %18 = vector.load %arg2[%c0_5, %c0_6] : memref<8x1xi32, #tpu.memory_space<vmem>>, vector<8x1xi32>
    %19 = tpu.iota {dimensions = array<i32: 1>} : vector<8x32xi32>
    %20 = vector.broadcast %18 : vector<8x1xi32> to vector<8x32xi32>
    %21 = arith.cmpi eq, %19, %20 : vector<8x32xi32>
    %cst_7 = arith.constant 0.999031245 : f32
    %cst_8 = arith.constant 3.125000e-05 : f32
    %22 = vector.broadcast %cst_7 : f32 to vector<8x32xf32>
    %23 = vector.broadcast %cst_8 : f32 to vector<8x32xf32>
    %24 = arith.select %21, %22, %23 : vector<8x32xi1>, vector<8x32xf32>
    %25 = arith.mulf %24, %16 : vector<8x32xf32>
    %cst_9 = arith.constant dense<0.000000e+00> : vector<8xf32>
    %26 = vector.multi_reduction <add>, %25, %cst_9 [1] : vector<8x32xf32> to vector<8xf32>
    %27 = vector.shape_cast %26 : vector<8xf32> to vector<8x1xf32>
    %28 = arith.subf %17, %27 : vector<8x1xf32>
    %29 = tpu.transpose %28, [1, 0] : vector<8x1xf32> -> vector<1x8xf32>
    %c0_10 = arith.constant 0 : index
    %c0_11 = arith.constant 0 : index
    %30 = vector.load %arg3[%c0_10, %c0_11] : memref<1x8xf32, #tpu.memory_space<vmem>>, vector<1x8xf32>
    tpu.vector_store %arg3[%c0_10, %c0_11], %29 {strides = array<i32>} : memref<1x8xf32, #tpu.memory_space<vmem>>, vector<1x8xf32>,
    return
  }
  func.func @transform_0(%arg0: i32) -> (i32, i32) {
    %c0_i32 = arith.constant 0 : i32
    %c0_i32_0 = arith.constant 0 : i32
    return %arg0, %c0_i32 : i32, i32
  }
  func.func @transform_1(%arg0: i32) -> (i32, i32) {
    %c0_i32 = arith.constant 0 : i32
    %c0_i32_0 = arith.constant 0 : i32
    return %arg0, %c0_i32 : i32, i32
  }
  func.func @transform_2(%arg0: i32) -> (i32, i32) {
    %c0_i32 = arith.constant 0 : i32
    %c0_i32_0 = arith.constant 0 : i32
    return %c0_i32, %arg0 : i32, i32
  }
}

</mosaic_0001>

<bundles_post_ra>
// kernel: tpu_custom_call.1
= control target key start
LH: loop header
LB: loop body
LE: loop exit
PB: predicated region body
PF: predicated region fallthrough
CT: control target
= control target key end

     0   :  { %s163_s0 = inlined_call_operand.vmem [shape: f32[8,32], index: 0, kind: input, shape index: {}]   ;;  %s164_s1 = inlined_call_operand.vmem [shape: s32[8,1], index: 1, kind: input, shape index: {}]   ;;  %s165_s2 = inlined_call_operand.hbm [shape: f32[1,8], index: 2, kind: output, shape index: {}]  }
   0x1   :  { %v12_v0 = vld [vmem:[%s163_s0] sm:$0xff] }
   0x2   :  { %7 = vsyncpa [#allocation3], 0  ;;  %v14_v1 = vmin.f32 %v12_v0, 20.0  ;;  %v134_v2 = vmov 0   ;;  %vm13_vm1 = vcmp.gt.f32.partialorder %v12_v0, 20.0  ;;  %vm27_vm2 = vcmask 261120  }
   0x3   :  { %103 = vset.pattern.permute.xlu0 %v134_v2  ;;  %v38_v15 = vld [vmem:[%s164_s1] sm:$0xff]  ;;  %v39_v20 = vlaneseq  ;;  %v135_v24 = vmov 3.125e-05   ;;  %s136_s1 = smov [#allocation2]   ;;  %vm83_vm4 = vcmask 57344  }
   0x4   :  { %v15_v3 = vmul.f32 1.442695, %v14_v1  ;;  %s91_s12 = sshll.u32 %s136_s1, 4  ;;  %s92_s12 = int_to_ptr.vmem [resolvable:$true] %s91_s12 }
   0x5   :  { %v40_v21 = vand.u32 127, %v39_v20  ;;  %s112_s13 = scalar_lea.vmem %s92_s12, 16  ;;  %s116_s14 = scalar_lea.vmem %s92_s12, 32 }
   0x6   :  { %104 = vpow2.f32 %v15_v3  ;;  %p113_p0 = scmp.ne.s32.totalorder %s92_s12, %s112_s13  ;;  %p117_p1 = scmp.lt.s32.totalorder %s92_s12, %s92_s12 }
   0x7   :  { %p118_p2 = scmp.lt.s32.totalorder %s116_s14, %s112_s13 }
   0x9   :  { %p119_p3 = por %p118_p2, %p117_p1 }
   0xb   :  { %p120_p4 = pnand %p119_p3, %p113_p0 }
  0x13   :  { %v105_v4 = vpop.eup %104 }
  0x14   :  { %v17_v5 = vadd.f32 1.0, %v105_v4  ;;  %v20_v6 = vmul.f32 -0.5, %v105_v4  ;;  %v23_v8 = vand.u32 2147483647, %v105_v4 }
  0x16   :  { %106 = vlog2.f32 %v17_v5  ;;  %v21_v7 = vadd.f32 1.0, %v20_v6  ;;  %vm24_vm0 = vcmp.lt.f32.partialorder %v23_v8, 0.0004427343 }
  0x18   :  { %v22_v9 = vmul.f32 %v105_v4, %v21_v7 }
  0x23   :  { %v107_v10 = vpop.eup %106 }
  0x24   :  { %v19_v11 = vmul.f32 0.6931472, %v107_v10 }
  0x26   :  { %v25_v12 = vsel %vm24_vm0, %v22_v9, %v19_v11 }
  0x27   :  { %v26_v13 = vsel %vm13_vm1, %v12_v0, %v25_v12 }
  0x28   :  { %v28_v14 = vsel %vm27_vm2, %v26_v13, 0.0 }
  0x29   :  { %29 = vadd.xlane.f32.xlu0 %v28_v14 }
  0x3f   :  { %42 = vperm.xlu0 %103, %v38_v15  }
  0xb2   :  { %v30_v16 = vpop.xlane.xlu0 %29 }
  0xb3   :  { %v31_v17 = vadd.f32 1e-08, %v30_v16 }
  0xb5   :  { %v32_v18 = vmul.f32 1e-08, %v31_v17 }
  0xb7   :  { %v33_v19 = vadd.f32 %v32_v18, %v26_v13 }
  0xb9   :  { %108 = vlog2.f32 %v33_v19 }
  0xba   :  { %v43_v22 = vpop.permute.xlu0 %42  ;;  %110 = vlog2.f32 %v31_v17 }
  0xbb   :  { %vm44_vm3 = vcmp.eq.s32.totalorder %v40_v21, %v43_v22 }
  0xbc   :  { %v45_v25 = vsel %vm44_vm3, 0.99903125, %v135_v24 }
  0xc6   :  { %v109_v23 = vpop.eup %108 }
  0xc7   :  { %v35_v26 = vmul.f32 0.6931472, %v109_v23  ;;  %v111_v29 = vpop.eup %110 }
  0xc8   :  { %v37_v30 = vmul.f32 0.6931472, %v111_v29 }
  0xc9   :  { %v46_v27 = vmul.f32 %v45_v25, %v35_v26 }
  0xcb   :  { %v47_v28 = vsel %vm27_vm2, %v46_v27, 0.0 }
  0xcc   :  { %48 = vadd.xlane.f32.xlu1 %v47_v28 }
 0x155   :  { %v49_v31 = vpop.xlane.xlu1 %48 }
 0x156   :  { %v50_v32 = vsub.f32 %v37_v30, %v49_v31 }
 0x158   :  { %51 = vxpose.xlu1.b32.start.end [1/1] (short) (narrow) %v50_v32, 8 }
 0x1d4   :  { %v67_v33 = vpop.trf.xlu1 }
 0x1d5   :  { %84 = vst.msk [vmem:[#allocation2] sm:$0x1] %vm83_vm4, %v67_v33 }
 0x1d6   :  { %123 = shalt.err (!%p120_p4)
}
 0x1d7   :  { %94 = dma.vmem_to_hbm [thread:$0]  %s92_s12, 16, %s165_s2, [#allocation3]  }
 0x1d8   :  { %132 = dma.done.wait [#allocation3], 16  }
 0x1d9   :  { %133 = vsyncadd [#allocation3], 4294967280 }
 0x1da   :  { %98 = vsyncpa [#allocation3], 1 }

</bundles_post_ra>
